<compile_context>
chip_gen: v6e
topology: v6e:2x2x1
jax: 0.10.0
libtpu: 0.0.40
codegen_flags: <defaults>
</compile_context>

<pallas_src>
import functools

import jax
import jax.numpy as jnp
from jax import lax
from jax.experimental import pallas as pl
from jax.experimental.pallas import tpu as pltpu

_EPS = 1e-5
_MIB = 1024 * 1024


def _layernorm_kernel(x_ref, g_ref, b_ref, o_ref, *, inv_f):
    # x_ref: (TR, F) tile of rows; g_ref/b_ref: (1, F); o_ref: (TR, F)
    x = x_ref[...].astype(jnp.float32)
    # Two-pass mean/var (numerically matches nn.LayerNorm); divides replaced
    # by a precomputed 1/F constant multiply. rsqrt runs on the EUP slot.
    mean = jnp.sum(x, axis=-1, keepdims=True) * inv_f
    centered = x - mean
    var = jnp.sum(centered * centered, axis=-1, keepdims=True) * inv_f
    y = centered * lax.rsqrt(var + _EPS)
    y = y * g_ref[...].astype(jnp.float32) + b_ref[...].astype(jnp.float32)
    o_ref[...] = y.astype(o_ref.dtype)


def _vmem_budget_bytes():
    """(pipelined-working-set budget, scoped vmem limit to request)."""
    try:
        phys = int(pltpu.get_tpu_info().vmem_capacity_bytes)
    except Exception:
        phys = 64 * _MIB  # conservative: v7x per-TensorCore VMEM
    # Request at most half of physical VMEM (v7x: 32 MiB, v5e/v6e: 64 MiB --
    # v5e's 16 MiB default scoped limit is too small for big tiles).
    limit = min(phys // 2, 64 * _MIB)
    # Keep the double-buffered in+out tiles within ~75% of the limit.
    budget = (limit * 3) // 4
    return budget, limit


def _pick_tile_rows(R, F, itemsize, budget_bytes):
    """Largest row tile that fits the VMEM budget (double-buffered in+out)."""
    # Native sublane packing: 8 rows for 4-byte, 16 for 2-byte, 32 for 1-byte.
    mult = 8 * max(1, 4 // max(1, itemsize))
    per_row = 2 * 2 * F * itemsize  # 2 buffers x (input tile + output tile)
    cap = max(mult, budget_bytes // per_row)
    cap = min(cap, 2048)  # diminishing returns past ~2K rows
    if R >= 1024:
        # Keep >= ~4 grid steps so both v7x TensorCores get work.
        cap = min(cap, -(-R // 4))
    if cap >= R:
        return R  # single full-extent block (allowed even if R % 8 != 0)
    return max(mult, (cap // mult) * mult)


def _layernorm_2d(x2d, gamma, beta, *, tile_rows, vmem_limit):
    R, F = x2d.shape
    g2 = gamma.reshape(1, F).astype(jnp.float32)
    b2 = beta.reshape(1, F).astype(jnp.float32)
    itemsize = jnp.dtype(x2d.dtype).itemsize
    cost = pl.CostEstimate(
        flops=8 * R * F,
        transcendentals=R,
        bytes_accessed=2 * R * F * itemsize + 2 * F * 4,
    )
    kernel = functools.partial(_layernorm_kernel, inv_f=1.0 / float(F))
    return pl.pallas_call(
        kernel,
        out_shape=jax.ShapeDtypeStruct((R, F), x2d.dtype),
        grid_spec=pltpu.PrefetchScalarGridSpec(
            num_scalar_prefetch=0,
            grid=(pl.cdiv(R, tile_rows),),
            in_specs=[
                pl.BlockSpec((tile_rows, F), lambda i: (i, 0)),
                pl.BlockSpec((1, F), lambda i: (0, 0)),
                pl.BlockSpec((1, F), lambda i: (0, 0)),
            ],
            out_specs=pl.BlockSpec((tile_rows, F), lambda i: (i, 0)),
        ),
        compiler_params=pltpu.CompilerParams(
            dimension_semantics=("parallel",),
            vmem_limit_bytes=vmem_limit,
        ),
        cost_estimate=cost,
    )(x2d, g2, b2)


class DynamicLayerNormPallas:
    """JAX/Pallas port of DynamicLayerNorm."""

    def __init__(self, initial_normalized_shape: int = 512):
        self.initial_normalized_shape = initial_normalized_shape
        self.params = {}  # dim_key (str) -> (gamma, beta)
        common_dims = [
            initial_normalized_shape,
            initial_normalized_shape * 2,
            initial_normalized_shape * 4,
        ]
        for dim in common_dims:
            self._init_dim(dim)
        for dim in [256, 768, 1024, 2048, 4096]:
            if dim not in common_dims:
                self._init_dim(dim)
        self._vmem_budget, self._vmem_limit = _vmem_budget_bytes()

    def _init_dim(self, dim: int):
        # nn.LayerNorm default init: weight=1, bias=0 (deterministic).
        key = str(dim)
        if key not in self.params:
            self.params[key] = (
                jnp.ones((dim,), jnp.float32),
                jnp.zeros((dim,), jnp.float32),
            )

    def __call__(self, x):
        feature_dim = x.shape[-1]
        key = str(feature_dim)
        if key not in self.params:
            # Dynamically create params for an unseen dimension.
            self._init_dim(feature_dim)
        gamma, beta = self.params[key]

        orig_shape = x.shape
        x2d = x.reshape(-1, feature_dim)
        R = x2d.shape[0]
        itemsize = jnp.dtype(x2d.dtype).itemsize
        tile_rows = _pick_tile_rows(R, feature_dim, itemsize, self._vmem_budget)
        out2d = _layernorm_2d(
            x2d, gamma, beta, tile_rows=tile_rows, vmem_limit=self._vmem_limit
        )
        return out2d.reshape(orig_shape)


def _reference_layernorm(x, gamma, beta, eps=_EPS):
    xf = x.astype(jnp.float32)
    mean = jnp.mean(xf, axis=-1, keepdims=True)
    var = jnp.mean((xf - mean) ** 2, axis=-1, keepdims=True)
    return ((xf - mean) * lax.rsqrt(var + eps) * gamma + beta).astype(x.dtype)


if __name__ == "__main__":
    key = jax.random.PRNGKey(0)
    ln = DynamicLayerNormPallas(initial_normalized_shape=512)

    # Small shapes consistent with [..., feature_dim]; second case has a row
    # count that is not a multiple of 8 to exercise the general tiling path.
    shapes = [((2, 8, 256), 256), ((3, 7, 512), 512)]
    for shape, hidden in shapes:
        key, sub = jax.random.split(key)
        x = jax.random.normal(sub, shape, dtype=jnp.float32)
        out = jax.block_until_ready(ln(x))

        gamma, beta = ln.params[str(hidden)]
        ref = _reference_layernorm(x, gamma, beta)
        assert out.shape == x.shape
        assert out.dtype == x.dtype
        assert jnp.max(jnp.abs(out - ref)) < 1e-4

    print("KERNEL_OK")
</pallas_src>

<mosaic_0001>
module attributes {stable_mosaic.version = 11 : i64} {
  func.func @_layernorm_kernel(%arg0: i32, %arg1: memref<16x256xf32, #tpu.memory_space<vmem>>, %arg2: memref<1x256xf32, #tpu.memory_space<vmem>>, %arg3: memref<1x256xf32, #tpu.memory_space<vmem>>, %arg4: memref<16x256xf32, #tpu.memory_space<vmem>>) attributes {dimension_semantics = [#tpu.dimension_semantics<parallel>], iteration_bounds = array<i64: 1>, scalar_prefetch = 0 : i64, scratch_operands = 0 : i64, tpu.core_type = #tpu.core_type<tc>, window_params = [{transform_indices = @transform_0, window_bounds = array<i64: 16, 256>}, {pipeline_mode = #tpu.pipeline_mode<synchronous>, transform_indices = @transform_1, window_bounds = array<i64: 1, 256>}, {pipeline_mode = #tpu.pipeline_mode<synchronous>, transform_indices = @transform_2, window_bounds = array<i64: 1, 256>}, {transform_indices = @transform_3, window_bounds = array<i64: 16, 256>}]} {
    %c0 = arith.constant 0 : index
    %c0_0 = arith.constant 0 : index
    %0 = vector.load %arg1[%c0, %c0_0] : memref<16x256xf32, #tpu.memory_space<vmem>>, vector<16x256xf32>
    %cst = arith.constant dense<0.000000e+00> : vector<16xf32>
    %1 = vector.multi_reduction <add>, %0, %cst [1] : vector<16x256xf32> to vector<16xf32>
    %2 = vector.shape_cast %1 : vector<16xf32> to vector<16x1xf32>
    %cst_1 = arith.constant 3.906250e-03 : f32
    %3 = vector.broadcast %cst_1 : f32 to vector<16x1xf32>
    %4 = arith.mulf %2, %3 : vector<16x1xf32>
    %5 = vector.broadcast %4 : vector<16x1xf32> to vector<16x256xf32>
    %6 = arith.subf %0, %5 : vector<16x256xf32>
    %7 = arith.mulf %6, %6 : vector<16x256xf32>
    %cst_2 = arith.constant dense<0.000000e+00> : vector<16xf32>
    %8 = vector.multi_reduction <add>, %7, %cst_2 [1] : vector<16x256xf32> to vector<16xf32>
    %9 = vector.shape_cast %8 : vector<16xf32> to vector<16x1xf32>
    %cst_3 = arith.constant 3.906250e-03 : f32
    %10 = vector.broadcast %cst_3 : f32 to vector<16x1xf32>
    %11 = arith.mulf %9, %10 : vector<16x1xf32>
    %cst_4 = arith.constant 9.99999974E-6 : f32
    %12 = vector.broadcast %cst_4 : f32 to vector<16x1xf32>
    %13 = arith.addf %11, %12 : vector<16x1xf32>
    %14 = math.rsqrt %13 : vector<16x1xf32>
    %15 = vector.broadcast %14 : vector<16x1xf32> to vector<16x256xf32>
    %16 = arith.mulf %6, %15 : vector<16x256xf32>
    %c0_5 = arith.constant 0 : index
    %c0_6 = arith.constant 0 : index
    %17 = vector.load %arg2[%c0_5, %c0_6] : memref<1x256xf32, #tpu.memory_space<vmem>>, vector<1x256xf32>
    %18 = vector.broadcast %17 : vector<1x256xf32> to vector<16x256xf32>
    %19 = arith.mulf %16, %18 : vector<16x256xf32>
    %c0_7 = arith.constant 0 : index
    %c0_8 = arith.constant 0 : index
    %20 = vector.load %arg3[%c0_7, %c0_8] : memref<1x256xf32, #tpu.memory_space<vmem>>, vector<1x256xf32>
    %21 = vector.broadcast %20 : vector<1x256xf32> to vector<16x256xf32>
    %22 = arith.addf %19, %21 : vector<16x256xf32>
    %c0_9 = arith.constant 0 : index
    %c0_10 = arith.constant 0 : index
    %23 = vector.load %arg4[%c0_9, %c0_10] : memref<16x256xf32, #tpu.memory_space<vmem>>, vector<16x256xf32>
    tpu.vector_store %arg4[%c0_9, %c0_10], %22 {strides = array<i32>} : memref<16x256xf32, #tpu.memory_space<vmem>>, vector<16x256xf32>,
    return
  }
  func.func @transform_0(%arg0: i32) -> (i32, i32) {
    %c0_i32 = arith.constant 0 : i32
    %c0_i32_0 = arith.constant 0 : i32
    return %arg0, %c0_i32 : i32, i32
  }
  func.func @transform_1(%arg0: i32) -> (i32, i32) {
    %c0_i32 = arith.constant 0 : i32
    %c0_i32_0 = arith.constant 0 : i32
    %c0_i32_1 = arith.constant 0 : i32
    return %c0_i32, %c0_i32_0 : i32, i32
  }
  func.func @transform_2(%arg0: i32) -> (i32, i32) {
    %c0_i32 = arith.constant 0 : i32
    %c0_i32_0 = arith.constant 0 : i32
    %c0_i32_1 = arith.constant 0 : i32
    return %c0_i32, %c0_i32_0 : i32, i32
  }
  func.func @transform_3(%arg0: i32) -> (i32, i32) {
    %c0_i32 = arith.constant 0 : i32
    %c0_i32_0 = arith.constant 0 : i32
    return %arg0, %c0_i32 : i32, i32
  }
}

</mosaic_0001>

<bundles_post_ra>
// kernel: tpu_custom_call.1
= control target key start
LH: loop header
LB: loop body
LE: loop exit
PB: predicated region body
PF: predicated region fallthrough
CT: control target
= control target key end

     0   :  { %8 = vsyncpa [#allocation3], 0  ;;  %s249_s0 = inlined_call_operand.hbm [shape: f32[16,256], index: 0, kind: input, shape index: {}]   ;;  %s250_s1 = inlined_call_operand.hbm [shape: f32[1,256], index: 1, kind: input, shape index: {}]   ;;  %s251_s2 = inlined_call_operand.vmem [shape: f32[1,256], index: 2, kind: input, shape index: {}]   ;;  %s252_s3 = inlined_call_operand.hbm [shape: f32[16,256], index: 3, kind: output, shape index: {}]  }
   0x1   :  { %9 = vsyncpa [#allocation6], 0 }
   0x2   :  { %10 = vsyncpa [#allocation4], 0  ;;  %s206_s12 = smov [#allocation2]  }
   0x3   :  { %s16_s13 = sshll.u32 %s206_s12, 4  ;;  %s17_s13 = int_to_ptr.vmem [resolvable:$true] %s16_s13 }
   0x4   :  { %s148_s14 = scalar_lea.vmem %s17_s13, 512  ;;  %p153_p1 = scmp.lt.s32.totalorder %s17_s13, %s17_s13 }
   0x5   :  { %p149_p0 = scmp.ne.s32.totalorder %s17_s13, %s148_s14  ;;  %p154_p2 = scmp.lt.s32.totalorder %s148_s14, %s148_s14 }
   0x7   :  { %p155_p3 = por %p154_p2, %p153_p1 }
   0x9   :  { %p156_p4 = pnand %p155_p3, %p149_p0 }
   0xb   :  { %159 = shalt.err (!%p156_p4)
}
   0xc   :  { %s207_s15 = smov 256   ;;  %s208_s16 = smov 16  }
   0xd   :  { %22 = dma.hbm_to_vmem [thread:$0]  %s249_s0, 512, %s17_s13, [#allocation3], %s207_s15, %s207_s15, %s208_s16  }
   0xe   :  { %s209_s19 = smov [#allocation5]  }
   0xf   :  { %s29_s20 = sshll.u32 %s209_s19, 4  ;;  %s30_s20 = int_to_ptr.vmem [resolvable:$true] %s29_s20 }
  0x10   :  { %s168_s21 = scalar_lea.vmem %s30_s20, 32  ;;  %p173_p6 = scmp.lt.s32.totalorder %s30_s20, %s30_s20 }
  0x11   :  { %p169_p5 = scmp.ne.s32.totalorder %s30_s20, %s168_s21  ;;  %p174_p7 = scmp.lt.s32.totalorder %s168_s21, %s168_s21 }
  0x13   :  { %p175_p8 = por %p174_p7, %p173_p6 }
  0x15   :  { %p176_p9 = pnand %p175_p8, %p169_p5 }
  0x17   :  { %179 = shalt.err (!%p176_p9)
}
  0x18   :  { %32 = dma.hbm_to_vmem [thread:$0]  %s250_s1, 32, %s30_s20, [#allocation6]  }
  0x19   :  { %200 = dma.done.wait [#allocation3], 512  }
  0x1a   :  { %201 = vsyncadd [#allocation3], 4294966784 }
  0x1b   :  { %202 = dma.done.wait [#allocation6], 32  }
  0x1c   :  { %203 = vsyncadd [#allocation6], 4294967264  ;;  %v41_v0 = vld [vmem:[#allocation2] sm:$0xff]  ;;  %v42_v1 = vld [vmem:[#allocation2 + $0x8] sm:$0xff]  ;;  %v79_v25 = vlaneseq  ;;  %s210_s24 = smov [#allocation7]  }
  0x1d   :  { %v43_v2 = vld [vmem:[#allocation2 + $0x10] sm:$0xff]  ;;  %v45_v3 = vadd.f32 %v42_v1, %v41_v0  ;;  %v44_v4 = vld [vmem:[#allocation2 + $0x18] sm:$0xff]  ;;  %v77_v30 = vld [vmem:[#allocation5] sm:$0x3]  ;;  %s118_s25 = sshll.u32 %s210_s24, 4  ;;  %s119_s25 = int_to_ptr.vmem [resolvable:$true] %s118_s25 }
  0x1e   :  { %v48_v5 = vadd.f32 %v44_v4, %v43_v2  ;;  %v80_v27 = vshrl.u32 %v79_v25, 7  ;;  %v93_v31 = vld [vmem:[%s251_s2] sm:$0x3]  ;;  %s180_s2 = scalar_lea.vmem %s119_s25, 512  ;;  %p185_p11 = scmp.lt.s32.totalorder %s119_s25, %s119_s25 }
  0x1f   :  { %46 = vadd.xlane.f32.xlu0 %v45_v3  ;;  %p181_p10 = scmp.ne.s32.totalorder %s119_s25, %s180_s2  ;;  %p186_p12 = scmp.lt.s32.totalorder %s180_s2, %s180_s2 }
  0x20   :  { %v81_v28 = vsub.s32 0, %v80_v27  ;;  %v85_v29 = vsub.s32 1, %v80_v27 }
  0x21   :  { %p187_p13 = por %p186_p12, %p185_p11 }
  0x22   :  { %v82_v32 = vrot.slane %v77_v30, %v81_v28  ;;  %v86_v33 = vrot.slane %v77_v30, %v85_v29  ;;  %v98_v37 = vrot.slane %v93_v31, %v81_v28  ;;  %v102_v38 = vrot.slane %v93_v31, %v85_v29 }
  0x23   :  { %49 = vadd.xlane.f32.xlu0 %v48_v5  ;;  %p188_p0 = pnand %p187_p13, %p181_p10 }
  0xa8   :  { %v47_v6 = vpop.xlane.xlu0 %46 }
  0xa9   :  { %v51_v7 = vmul.f32 0.00390625, %v47_v6 }
  0xab   :  { %v53_v8 = vsub.f32 %v41_v0, %v51_v7  ;;  %v54_v9 = vsub.f32 %v42_v1, %v51_v7 }
  0xac   :  { %v50_v10 = vpop.xlane.xlu0 %49 }
  0xad   :  { %v52_v11 = vmul.f32 0.00390625, %v50_v10  ;;  %v57_v12 = vmul.f32 %v53_v8, %v53_v8  ;;  %v58_v13 = vmul.f32 %v54_v9, %v54_v9 }
  0xaf   :  { %v55_v14 = vsub.f32 %v43_v2, %v52_v11  ;;  %v56_v15 = vsub.f32 %v44_v4, %v52_v11  ;;  %v61_v16 = vadd.f32 %v58_v13, %v57_v12 }
  0xb1   :  { %62 = vadd.xlane.f32.xlu1 %v61_v16  ;;  %v59_v17 = vmul.f32 %v55_v14, %v55_v14  ;;  %v60_v18 = vmul.f32 %v56_v15, %v56_v15 }
  0xb3   :  { %v64_v19 = vadd.f32 %v60_v18, %v59_v17 }
  0xb5   :  { %65 = vadd.xlane.f32.xlu1 %v64_v19 }
 0x13a   :  { %v63_v20 = vpop.xlane.xlu1 %62 }
 0x13b   :  { %v67_v21 = vmul.f32 0.00390625, %v63_v20 }
 0x13d   :  { %v69_v22 = vadd.f32 1e-05, %v67_v21 }
 0x13e   :  { %v66_v23 = vpop.xlane.xlu1 %65 }
 0x13f   :  { %136 = vrsqrt.f32 %v69_v22  ;;  %v68_v24 = vmul.f32 0.00390625, %v66_v23 }
 0x141   :  { %v70_v26 = vadd.f32 1e-05, %v68_v24 }
 0x143   :  { %138 = vrsqrt.f32 %v70_v26 }
 0x14c   :  { %v137_v34 = vpop.eup %136 }
 0x14d   :  { %v73_v35 = vmul.f32 %v137_v34, %v53_v8  ;;  %v74_v36 = vmul.f32 %v137_v34, %v54_v9 }
 0x14f   :  { %v89_v39 = vmul.f32 %v82_v32, %v73_v35  ;;  %v90_v40 = vmul.f32 %v86_v33, %v74_v36 }
 0x150   :  { %v139_v41 = vpop.eup %138 }
 0x151   :  { %v75_v42 = vmul.f32 %v139_v41, %v55_v14  ;;  %v76_v43 = vmul.f32 %v139_v41, %v56_v15  ;;  %v105_v44 = vadd.f32 %v98_v37, %v89_v39  ;;  %v106_v45 = vadd.f32 %v102_v38, %v90_v40 }
 0x153   :  { %v91_v46 = vmul.f32 %v82_v32, %v75_v42  ;;  %v92_v47 = vmul.f32 %v86_v33, %v76_v43  ;;  %109 = vst [vmem:[#allocation7] sm:$0xff] %v105_v44  ;;  %110 = vst [vmem:[#allocation7 + $0x8] sm:$0xff] %v106_v45 }
 0x155   :  { %v107_v48 = vadd.f32 %v98_v37, %v91_v46  ;;  %v108_v49 = vadd.f32 %v102_v38, %v92_v47 }
 0x157   :  { %111 = vst [vmem:[#allocation7 + $0x10] sm:$0xff] %v107_v48  ;;  %112 = vst [vmem:[#allocation7 + $0x18] sm:$0xff] %v108_v49 }
 0x158   :  { %191 = shalt.err (!%p188_p0)
}
 0x159   :  { %124 = dma.vmem_to_hbm [thread:$0]  %s119_s25, 512, %s252_s3, [#allocation4], %s207_s15, %s207_s15, %s208_s16  }
 0x15a   :  { %204 = dma.done.wait [#allocation4], 512  }
 0x15b   :  { %205 = vsyncadd [#allocation4], 4294966784 }
 0x15c   :  { %128 = vsyncpa [#allocation3], 1 }
 0x15d   :  { %129 = vsyncpa [#allocation6], 1 }
 0x15e   :  { %130 = vsyncpa [#allocation4], 1 }

</bundles_post_ra>
